<compile_context>
chip_gen: v7x
topology: tpu7x:2x2x1
jax: 0.10.0
libtpu: 0.0.40
codegen_flags: <defaults>
</compile_context>

<pallas_src>
import jax
import jax.numpy as jnp
from jax.experimental import pallas as pl
from jax.experimental.pallas import tpu as pltpu


def _round_up(n, m):
    return ((n + m - 1) // m) * m


def cst_kernel(x_ref, scal_ref, w3_ref, w4_ref, w5_ref, w6_ref, b_ref, o_ref):
    H1 = w3_ref.shape[1]
    H2 = w4_ref.shape[1]
    C = w5_ref.shape[1]

    x = x_ref[...]                       # [TB, 2]
    c0 = x[:, 0:1]
    c1 = x[:, 1:2]

    # fc1 -> fc7 on column 0, fc2 -> fc8 on column 1 (scalar affine + ReLU, VPU).
    # scal layout: [w1, b1, w7, b7, w2, b2, w8, b8] in SMEM.
    h0 = jnp.maximum(c0 * scal_ref[0] + scal_ref[1], 0.0)
    h0 = jnp.maximum(h0 * scal_ref[2] + scal_ref[3], 0.0)
    h1 = jnp.maximum(c1 * scal_ref[4] + scal_ref[5], 0.0)
    h1 = jnp.maximum(h1 * scal_ref[6] + scal_ref[7], 0.0)

    # fc3: [TB,2] @ [2,H1] done as a VPU broadcast-FMA (K=2 would waste a full
    # MXU pass); also fuses the concat([h0, h1]) from the reference graph.
    b3 = b_ref[0:1, 0:H1]
    h = jnp.maximum(h0 * w3_ref[0:1, :] + h1 * w3_ref[1:2, :] + b3, 0.0)

    # fc4: [TB,H1] @ [H1,H2] on the MXU.
    b4 = b_ref[1:2, 0:H2]
    h = jnp.maximum(
        jnp.dot(h, w4_ref[...], preferred_element_type=jnp.float32) + b4, 0.0)

    # fc5: [TB,H2] @ [H2,C] on the MXU.
    b5 = b_ref[2:3, 0:C]
    h = jnp.maximum(
        jnp.dot(h, w5_ref[...], preferred_element_type=jnp.float32) + b5, 0.0)

    # fc6: [TB,C] @ [C,C]. For tiny C, an unrolled VPU FMA beats a K=C MXU pass.
    b6 = b_ref[3:4, 0:C]
    if C <= 16:
        w6 = w6_ref[...]
        acc = h[:, 0:1] * w6[0:1, :] + b6
        for k in range(1, C):
            acc = acc + h[:, k:k + 1] * w6[k:k + 1, :]
        h = jnp.maximum(acc, 0.0)
    else:
        h = jnp.maximum(
            jnp.dot(h, w6_ref[...], preferred_element_type=jnp.float32) + b6, 0.0)

    o_ref[...] = h.astype(o_ref.dtype)


def make_params(key, hidden_size_1, hidden_size_2, num_classes):
    """Deterministic kaiming-normal-style init (fan_in based), PyTorch layout."""
    def kaiming(k, out_f, in_f):
        std = (2.0 / in_f) ** 0.5
        return std * jax.random.normal(k, (out_f, in_f), jnp.float32)

    def bias(k, out_f, in_f):
        bound = 1.0 / (in_f ** 0.5)
        return jax.random.uniform(k, (out_f,), jnp.float32, -bound, bound)

    ks = jax.random.split(key, 16)
    p = {}
    p["w1"], p["b1"] = kaiming(ks[0], 1, 1), bias(ks[1], 1, 1)
    p["w7"], p["b7"] = kaiming(ks[2], 1, 1), bias(ks[3], 1, 1)
    p["w2"], p["b2"] = kaiming(ks[4], 1, 1), bias(ks[5], 1, 1)
    p["w8"], p["b8"] = kaiming(ks[6], 1, 1), bias(ks[7], 1, 1)
    p["w3"], p["b3"] = kaiming(ks[8], hidden_size_1, 2), bias(ks[9], hidden_size_1, 2)
    p["w4"], p["b4"] = (kaiming(ks[10], hidden_size_2, hidden_size_1),
                        bias(ks[11], hidden_size_2, hidden_size_1))
    p["w5"], p["b5"] = (kaiming(ks[12], num_classes, hidden_size_2),
                        bias(ks[13], num_classes, hidden_size_2))
    p["w6"], p["b6"] = (kaiming(ks[14], num_classes, num_classes),
                        bias(ks[15], num_classes, num_classes))
    return p


def pack_params(params):
    """One-time packing into kernel layout (hoisted out of the per-call path)."""
    H1 = params["w3"].shape[0]
    H2 = params["w4"].shape[0]
    C = params["w5"].shape[0]
    bmax = max(H1, H2, C)

    # 8 scalars for the four Linear(1,1) layers, SMEM-bound:
    # [w1, b1, w7, b7, w2, b2, w8, b8]
    scal = jnp.stack([
        params["w1"][0, 0], params["b1"][0],
        params["w7"][0, 0], params["b7"][0],
        params["w2"][0, 0], params["b2"][0],
        params["w8"][0, 0], params["b8"][0],
    ]).astype(jnp.float32)

    # Trunk biases packed into one (4, bmax) array (rows: b3, b4, b5, b6).
    b_pack = jnp.zeros((4, bmax), jnp.float32)
    b_pack = b_pack.at[0, :H1].set(params["b3"])
    b_pack = b_pack.at[1, :H2].set(params["b4"])
    b_pack = b_pack.at[2, :C].set(params["b5"])
    b_pack = b_pack.at[3, :C].set(params["b6"])

    return {
        "scal": scal,
        "w3": jnp.asarray(params["w3"].T, jnp.float32),   # [2,  H1]
        "w4": jnp.asarray(params["w4"].T, jnp.float32),   # [H1, H2]
        "w5": jnp.asarray(params["w5"].T, jnp.float32),   # [H2, C ]
        "w6": jnp.asarray(params["w6"].T, jnp.float32),   # [C,  C ]
        "b_pack": b_pack,                                  # [4,  bmax]
        "dims": (H1, H2, C, bmax),
    }


def cst_model2_forward(x, packed):
    """x: [B, F] float32 (F >= 2). Returns [B, num_classes]."""
    assert x.ndim == 2 and x.shape[1] >= 2, "forward needs at least 2 feature cols"
    B = x.shape[0]
    H1, H2, C, bmax = packed["dims"]

    x2 = x[:, :2].astype(jnp.float32)    # only columns 0 and 1 are used

    # Batch tile: multiple of 8 sublanes, capped so double-buffered tiles stay
    # tiny vs. VMEM even on v7x (TB=1024 -> ~16 KiB/in-buffer, ~32 KiB/out).
    TB = min(1024, _round_up(B, 8))
    grid = (pl.cdiv(B, TB),)

    flops = 2 * B * (2 * H1 + H1 * H2 + H2 * C + C * C)
    bytes_accessed = (B * (2 + C) * 4
                      + (2 * H1 + H1 * H2 + H2 * C + C * C) * 4
                      + (4 * bmax + 8) * 4)

    out = pl.pallas_call(
        cst_kernel,
        out_shape=jax.ShapeDtypeStruct((B, C), jnp.float32),
        grid=grid,
        in_specs=[
            pl.BlockSpec((TB, 2), lambda i: (i, 0)),                  # x tile
            pl.BlockSpec(memory_space=pltpu.MemorySpace.SMEM),        # 8 scalars
            pl.BlockSpec((2, H1), lambda i: (0, 0)),                  # w3 (resident)
            pl.BlockSpec((H1, H2), lambda i: (0, 0)),                 # w4 (resident)
            pl.BlockSpec((H2, C), lambda i: (0, 0)),                  # w5 (resident)
            pl.BlockSpec((C, C), lambda i: (0, 0)),                   # w6 (resident)
            pl.BlockSpec((4, bmax), lambda i: (0, 0)),                # packed biases
        ],
        out_specs=pl.BlockSpec((TB, C), lambda i: (i, 0)),
        compiler_params=pltpu.CompilerParams(
            dimension_semantics=("parallel",)),
        cost_estimate=pl.CostEstimate(
            flops=flops, transcendentals=0, bytes_accessed=bytes_accessed),
    )(x2, packed["scal"], packed["w3"], packed["w4"], packed["w5"],
      packed["w6"], packed["b_pack"])
    return out


def reference_forward(x, params):
    """Pure-JAX reference mirroring the PyTorch forward."""
    def lin(h, w, b):
        return h @ w.T + b
    x1 = jax.nn.relu(lin(x[:, 0:1], params["w1"], params["b1"]))
    x1 = jax.nn.relu(lin(x1, params["w7"], params["b7"]))
    x2 = jax.nn.relu(lin(x[:, 1:2], params["w2"], params["b2"]))
    x2 = jax.nn.relu(lin(x2, params["w8"], params["b8"]))
    h = jnp.concatenate([x1, x2], axis=1)
    h = jax.nn.relu(lin(h, params["w3"], params["b3"]))
    h = jax.nn.relu(lin(h, params["w4"], params["b4"]))
    h = jax.nn.relu(lin(h, params["w5"], params["b5"]))
    return jax.nn.relu(lin(h, params["w6"], params["b6"]))


if __name__ == "__main__":
    key = jax.random.PRNGKey(0)
    k_param, k_x = jax.random.split(key)

    # small shapes consistent with the module
    batch, input_size = 8, 2
    hidden_size_1, hidden_size_2, num_classes = 32, 64, 8

    params = make_params(k_param, hidden_size_1, hidden_size_2, num_classes)
    packed = pack_params(params)          # one-time packing (not in hot path)
    x = jax.random.normal(k_x, (batch, input_size), jnp.float32)

    out = cst_model2_forward(x, packed)
    out = jax.block_until_ready(out)

    ref = reference_forward(x, params)
    assert out.shape == (batch, num_classes)
    assert jnp.allclose(out, ref, atol=1e-5, rtol=1e-5), "mismatch vs reference"

    print("KERNEL_OK")
</pallas_src>

<mosaic_0001>
module attributes {stable_mosaic.version = 11 : i64} {
  func.func @cst_kernel(%arg0: i32, %arg1: memref<8x2xf32, #tpu.memory_space<vmem>>, %arg2: memref<8xf32, #tpu.memory_space<smem>>, %arg3: memref<2x32xf32, #tpu.memory_space<vmem>>, %arg4: memref<32x64xf32, #tpu.memory_space<vmem>>, %arg5: memref<64x8xf32, #tpu.memory_space<vmem>>, %arg6: memref<8x8xf32, #tpu.memory_space<vmem>>, %arg7: memref<4x64xf32, #tpu.memory_space<vmem>>, %arg8: memref<8x8xf32, #tpu.memory_space<vmem>>) attributes {dimension_semantics = [#tpu.dimension_semantics<parallel>], iteration_bounds = array<i64: 1>, scalar_prefetch = 0 : i64, scratch_operands = 0 : i64, tpu.core_type = #tpu.core_type<tc>, window_params = [{transform_indices = @transform_0, window_bounds = array<i64: 8, 2>}, {transform_indices = @transform_1, window_bounds = array<i64: 8>}, {pipeline_mode = #tpu.pipeline_mode<synchronous>, transform_indices = @transform_2, window_bounds = array<i64: 2, 32>}, {pipeline_mode = #tpu.pipeline_mode<synchronous>, transform_indices = @transform_3, window_bounds = array<i64: 32, 64>}, {pipeline_mode = #tpu.pipeline_mode<synchronous>, transform_indices = @transform_4, window_bounds = array<i64: 64, 8>}, {pipeline_mode = #tpu.pipeline_mode<synchronous>, transform_indices = @transform_5, window_bounds = array<i64: 8, 8>}, {pipeline_mode = #tpu.pipeline_mode<synchronous>, transform_indices = @transform_6, window_bounds = array<i64: 4, 64>}, {transform_indices = @transform_7, window_bounds = array<i64: 8, 8>}]} {
    %c0 = arith.constant 0 : index
    %c0_0 = arith.constant 0 : index
    %0 = vector.load %arg1[%c0, %c0_0] : memref<8x2xf32, #tpu.memory_space<vmem>>, vector<8x2xf32>
    %1 = vector.extract_strided_slice %0 {offsets = [0, 0], sizes = [8, 1], strides = [1, 1]} : vector<8x2xf32> to vector<8x1xf32>
    %2 = vector.extract_strided_slice %0 {offsets = [0, 1], sizes = [8, 1], strides = [1, 1]} : vector<8x2xf32> to vector<8x1xf32>
    %c0_1 = arith.constant 0 : index
    %3 = memref.load %arg2[%c0_1] : memref<8xf32, #tpu.memory_space<smem>>
    %4 = vector.broadcast %3 : f32 to vector<8x1xf32>
    %5 = arith.mulf %1, %4 : vector<8x1xf32>
    %c1 = arith.constant 1 : index
    %6 = memref.load %arg2[%c1] : memref<8xf32, #tpu.memory_space<smem>>
    %7 = vector.broadcast %6 : f32 to vector<8x1xf32>
    %8 = arith.addf %5, %7 : vector<8x1xf32>
    %cst = arith.constant 0.000000e+00 : f32
    %9 = vector.broadcast %cst : f32 to vector<8x1xf32>
    %10 = arith.maximumf %8, %9 : vector<8x1xf32>
    %c2 = arith.constant 2 : index
    %11 = memref.load %arg2[%c2] : memref<8xf32, #tpu.memory_space<smem>>
    %12 = vector.broadcast %11 : f32 to vector<8x1xf32>
    %13 = arith.mulf %10, %12 : vector<8x1xf32>
    %c3 = arith.constant 3 : index
    %14 = memref.load %arg2[%c3] : memref<8xf32, #tpu.memory_space<smem>>
    %15 = vector.broadcast %14 : f32 to vector<8x1xf32>
    %16 = arith.addf %13, %15 : vector<8x1xf32>
    %cst_2 = arith.constant 0.000000e+00 : f32
    %17 = vector.broadcast %cst_2 : f32 to vector<8x1xf32>
    %18 = arith.maximumf %16, %17 : vector<8x1xf32>
    %c4 = arith.constant 4 : index
    %19 = memref.load %arg2[%c4] : memref<8xf32, #tpu.memory_space<smem>>
    %20 = vector.broadcast %19 : f32 to vector<8x1xf32>
    %21 = arith.mulf %2, %20 : vector<8x1xf32>
    %c5 = arith.constant 5 : index
    %22 = memref.load %arg2[%c5] : memref<8xf32, #tpu.memory_space<smem>>
    %23 = vector.broadcast %22 : f32 to vector<8x1xf32>
    %24 = arith.addf %21, %23 : vector<8x1xf32>
    %cst_3 = arith.constant 0.000000e+00 : f32
    %25 = vector.broadcast %cst_3 : f32 to vector<8x1xf32>
    %26 = arith.maximumf %24, %25 : vector<8x1xf32>
    %c6 = arith.constant 6 : index
    %27 = memref.load %arg2[%c6] : memref<8xf32, #tpu.memory_space<smem>>
    %28 = vector.broadcast %27 : f32 to vector<8x1xf32>
    %29 = arith.mulf %26, %28 : vector<8x1xf32>
    %c7 = arith.constant 7 : index
    %30 = memref.load %arg2[%c7] : memref<8xf32, #tpu.memory_space<smem>>
    %31 = vector.broadcast %30 : f32 to vector<8x1xf32>
    %32 = arith.addf %29, %31 : vector<8x1xf32>
    %cst_4 = arith.constant 0.000000e+00 : f32
    %33 = vector.broadcast %cst_4 : f32 to vector<8x1xf32>
    %34 = arith.maximumf %32, %33 : vector<8x1xf32>
    %c0_5 = arith.constant 0 : index
    %c0_6 = arith.constant 0 : index
    %35 = vector.load %arg7[%c0_5, %c0_6] : memref<4x64xf32, #tpu.memory_space<vmem>>, vector<1x32xf32>
    %c0_7 = arith.constant 0 : index
    %c0_8 = arith.constant 0 : index
    %36 = vector.load %arg3[%c0_7, %c0_8] : memref<2x32xf32, #tpu.memory_space<vmem>>, vector<1x32xf32>
    %37 = vector.broadcast %18 : vector<8x1xf32> to vector<8x32xf32>
    %38 = vector.broadcast %36 : vector<1x32xf32> to vector<8x32xf32>
    %39 = arith.mulf %37, %38 : vector<8x32xf32>
    %c1_9 = arith.constant 1 : index
    %c0_10 = arith.constant 0 : index
    %40 = vector.load %arg3[%c1_9, %c0_10] : memref<2x32xf32, #tpu.memory_space<vmem>>, vector<1x32xf32>
    %41 = vector.broadcast %34 : vector<8x1xf32> to vector<8x32xf32>
    %42 = vector.broadcast %40 : vector<1x32xf32> to vector<8x32xf32>
    %43 = arith.mulf %41, %42 : vector<8x32xf32>
    %44 = arith.addf %39, %43 : vector<8x32xf32>
    %45 = vector.broadcast %35 : vector<1x32xf32> to vector<8x32xf32>
    %46 = arith.addf %44, %45 : vector<8x32xf32>
    %cst_11 = arith.constant 0.000000e+00 : f32
    %47 = vector.broadcast %cst_11 : f32 to vector<8x32xf32>
    %48 = arith.maximumf %46, %47 : vector<8x32xf32>
    %c1_12 = arith.constant 1 : index
    %c0_13 = arith.constant 0 : index
    %49 = vector.load %arg7[%c1_12, %c0_13] : memref<4x64xf32, #tpu.memory_space<vmem>>, vector<1x64xf32>
    %c0_14 = arith.constant 0 : index
    %c0_15 = arith.constant 0 : index
    %50 = vector.load %arg4[%c0_14, %c0_15] : memref<32x64xf32, #tpu.memory_space<vmem>>, vector<32x64xf32>
    %cst_16 = arith.constant dense<0.000000e+00> : vector<8x64xf32>
    %51 = tpu.matmul %48, %50, %cst_16 {dimension_numbers = #tpu.dot_dimension_numbers<[1], [0], [0], [1], [0, 0, 1, 1], [], []>} : vector<8x32xf32>, vector<32x64xf32>, vector<8x64xf32> -> vector<8x64xf32>
    %52 = vector.broadcast %49 : vector<1x64xf32> to vector<8x64xf32>
    %53 = arith.addf %51, %52 : vector<8x64xf32>
    %cst_17 = arith.constant 0.000000e+00 : f32
    %54 = vector.broadcast %cst_17 : f32 to vector<8x64xf32>
    %55 = arith.maximumf %53, %54 : vector<8x64xf32>
    %c2_18 = arith.constant 2 : index
    %c0_19 = arith.constant 0 : index
    %56 = vector.load %arg7[%c2_18, %c0_19] : memref<4x64xf32, #tpu.memory_space<vmem>>, vector<1x8xf32>
    %c0_20 = arith.constant 0 : index
    %c0_21 = arith.constant 0 : index
    %57 = vector.load %arg5[%c0_20, %c0_21] : memref<64x8xf32, #tpu.memory_space<vmem>>, vector<64x8xf32>
    %cst_22 = arith.constant dense<0.000000e+00> : vector<8x8xf32>
    %58 = tpu.matmul %55, %57, %cst_22 {dimension_numbers = #tpu.dot_dimension_numbers<[1], [0], [0], [1], [0, 0, 1, 1], [], []>} : vector<8x64xf32>, vector<64x8xf32>, vector<8x8xf32> -> vector<8x8xf32>
    %59 = vector.broadcast %56 : vector<1x8xf32> to vector<8x8xf32>
    %60 = arith.addf %58, %59 : vector<8x8xf32>
    %cst_23 = arith.constant 0.000000e+00 : f32
    %61 = vector.broadcast %cst_23 : f32 to vector<8x8xf32>
    %62 = arith.maximumf %60, %61 : vector<8x8xf32>
    %c3_24 = arith.constant 3 : index
    %c0_25 = arith.constant 0 : index
    %63 = vector.load %arg7[%c3_24, %c0_25] : memref<4x64xf32, #tpu.memory_space<vmem>>, vector<1x8xf32>
    %c0_26 = arith.constant 0 : index
    %c0_27 = arith.constant 0 : index
    %64 = vector.load %arg6[%c0_26, %c0_27] : memref<8x8xf32, #tpu.memory_space<vmem>>, vector<8x8xf32>
    %65 = vector.extract_strided_slice %62 {offsets = [0, 0], sizes = [8, 1], strides = [1, 1]} : vector<8x8xf32> to vector<8x1xf32>
    %66 = vector.extract_strided_slice %64 {offsets = [0, 0], sizes = [1, 8], strides = [1, 1]} : vector<8x8xf32> to vector<1x8xf32>
    %67 = vector.broadcast %65 : vector<8x1xf32> to vector<8x8xf32>
    %68 = vector.broadcast %66 : vector<1x8xf32> to vector<8x8xf32>
    %69 = arith.mulf %67, %68 : vector<8x8xf32>
    %70 = vector.broadcast %63 : vector<1x8xf32> to vector<8x8xf32>
    %71 = arith.addf %69, %70 : vector<8x8xf32>
    %72 = vector.extract_strided_slice %62 {offsets = [0, 1], sizes = [8, 1], strides = [1, 1]} : vector<8x8xf32> to vector<8x1xf32>
    %73 = vector.extract_strided_slice %64 {offsets = [1, 0], sizes = [1, 8], strides = [1, 1]} : vector<8x8xf32> to vector<1x8xf32>
    %74 = vector.broadcast %72 : vector<8x1xf32> to vector<8x8xf32>
    %75 = vector.broadcast %73 : vector<1x8xf32> to vector<8x8xf32>
    %76 = arith.mulf %74, %75 : vector<8x8xf32>
    %77 = arith.addf %71, %76 : vector<8x8xf32>
    %78 = vector.extract_strided_slice %62 {offsets = [0, 2], sizes = [8, 1], strides = [1, 1]} : vector<8x8xf32> to vector<8x1xf32>
    %79 = vector.extract_strided_slice %64 {offsets = [2, 0], sizes = [1, 8], strides = [1, 1]} : vector<8x8xf32> to vector<1x8xf32>
    %80 = vector.broadcast %78 : vector<8x1xf32> to vector<8x8xf32>
    %81 = vector.broadcast %79 : vector<1x8xf32> to vector<8x8xf32>
    %82 = arith.mulf %80, %81 : vector<8x8xf32>
    %83 = arith.addf %77, %82 : vector<8x8xf32>
    %84 = vector.extract_strided_slice %62 {offsets = [0, 3], sizes = [8, 1], strides = [1, 1]} : vector<8x8xf32> to vector<8x1xf32>
    %85 = vector.extract_strided_slice %64 {offsets = [3, 0], sizes = [1, 8], strides = [1, 1]} : vector<8x8xf32> to vector<1x8xf32>
    %86 = vector.broadcast %84 : vector<8x1xf32> to vector<8x8xf32>
    %87 = vector.broadcast %85 : vector<1x8xf32> to vector<8x8xf32>
    %88 = arith.mulf %86, %87 : vector<8x8xf32>
    %89 = arith.addf %83, %88 : vector<8x8xf32>
    %90 = vector.extract_strided_slice %62 {offsets = [0, 4], sizes = [8, 1], strides = [1, 1]} : vector<8x8xf32> to vector<8x1xf32>
    %91 = vector.extract_strided_slice %64 {offsets = [4, 0], sizes = [1, 8], strides = [1, 1]} : vector<8x8xf32> to vector<1x8xf32>
    %92 = vector.broadcast %90 : vector<8x1xf32> to vector<8x8xf32>
    %93 = vector.broadcast %91 : vector<1x8xf32> to vector<8x8xf32>
    %94 = arith.mulf %92, %93 : vector<8x8xf32>
    %95 = arith.addf %89, %94 : vector<8x8xf32>
    %96 = vector.extract_strided_slice %62 {offsets = [0, 5], sizes = [8, 1], strides = [1, 1]} : vector<8x8xf32> to vector<8x1xf32>
    %97 = vector.extract_strided_slice %64 {offsets = [5, 0], sizes = [1, 8], strides = [1, 1]} : vector<8x8xf32> to vector<1x8xf32>
    %98 = vector.broadcast %96 : vector<8x1xf32> to vector<8x8xf32>
    %99 = vector.broadcast %97 : vector<1x8xf32> to vector<8x8xf32>
    %100 = arith.mulf %98, %99 : vector<8x8xf32>
    %101 = arith.addf %95, %100 : vector<8x8xf32>
    %102 = vector.extract_strided_slice %62 {offsets = [0, 6], sizes = [8, 1], strides = [1, 1]} : vector<8x8xf32> to vector<8x1xf32>
    %103 = vector.extract_strided_slice %64 {offsets = [6, 0], sizes = [1, 8], strides = [1, 1]} : vector<8x8xf32> to vector<1x8xf32>
    %104 = vector.broadcast %102 : vector<8x1xf32> to vector<8x8xf32>
    %105 = vector.broadcast %103 : vector<1x8xf32> to vector<8x8xf32>
    %106 = arith.mulf %104, %105 : vector<8x8xf32>
    %107 = arith.addf %101, %106 : vector<8x8xf32>
    %108 = vector.extract_strided_slice %62 {offsets = [0, 7], sizes = [8, 1], strides = [1, 1]} : vector<8x8xf32> to vector<8x1xf32>
    %109 = vector.extract_strided_slice %64 {offsets = [7, 0], sizes = [1, 8], strides = [1, 1]} : vector<8x8xf32> to vector<1x8xf32>
    %110 = vector.broadcast %108 : vector<8x1xf32> to vector<8x8xf32>
    %111 = vector.broadcast %109 : vector<1x8xf32> to vector<8x8xf32>
    %112 = arith.mulf %110, %111 : vector<8x8xf32>
    %113 = arith.addf %107, %112 : vector<8x8xf32>
    %cst_28 = arith.constant 0.000000e+00 : f32
    %114 = vector.broadcast %cst_28 : f32 to vector<8x8xf32>
    %115 = arith.maximumf %113, %114 : vector<8x8xf32>
    %c0_29 = arith.constant 0 : index
    %c0_30 = arith.constant 0 : index
    %116 = vector.load %arg8[%c0_29, %c0_30] : memref<8x8xf32, #tpu.memory_space<vmem>>, vector<8x8xf32>
    tpu.vector_store %arg8[%c0_29, %c0_30], %115 {strides = array<i32>} : memref<8x8xf32, #tpu.memory_space<vmem>>, vector<8x8xf32>,
    return
  }
  func.func @transform_0(%arg0: i32) -> (i32, i32) {
    %c0_i32 = arith.constant 0 : i32
    %c0_i32_0 = arith.constant 0 : i32
    return %arg0, %c0_i32 : i32, i32
  }
  func.func @transform_1(%arg0: i32) -> i32 {
    %c0_i32 = arith.constant 0 : i32
    %c0_i32_0 = arith.constant 0 : i32
    return %c0_i32 : i32
  }
  func.func @transform_2(%arg0: i32) -> (i32, i32) {
    %c0_i32 = arith.constant 0 : i32
    %c0_i32_0 = arith.constant 0 : i32
    %c0_i32_1 = arith.constant 0 : i32
    return %c0_i32, %c0_i32_0 : i32, i32
  }
  func.func @transform_3(%arg0: i32) -> (i32, i32) {
    %c0_i32 = arith.constant 0 : i32
    %c0_i32_0 = arith.constant 0 : i32
    %c0_i32_1 = arith.constant 0 : i32
    return %c0_i32, %c0_i32_0 : i32, i32
  }
  func.func @transform_4(%arg0: i32) -> (i32, i32) {
    %c0_i32 = arith.constant 0 : i32
    %c0_i32_0 = arith.constant 0 : i32
    %c0_i32_1 = arith.constant 0 : i32
    return %c0_i32, %c0_i32_0 : i32, i32
  }
  func.func @transform_5(%arg0: i32) -> (i32, i32) {
    %c0_i32 = arith.constant 0 : i32
    %c0_i32_0 = arith.constant 0 : i32
    %c0_i32_1 = arith.constant 0 : i32
    return %c0_i32, %c0_i32_0 : i32, i32
  }
  func.func @transform_6(%arg0: i32) -> (i32, i32) {
    %c0_i32 = arith.constant 0 : i32
    %c0_i32_0 = arith.constant 0 : i32
    %c0_i32_1 = arith.constant 0 : i32
    return %c0_i32, %c0_i32_0 : i32, i32
  }
  func.func @transform_7(%arg0: i32) -> (i32, i32) {
    %c0_i32 = arith.constant 0 : i32
    %c0_i32_0 = arith.constant 0 : i32
    return %arg0, %c0_i32 : i32, i32
  }
}

</mosaic_0001>

<bundles_post_ra>
// kernel: tpu_custom_call.1
= control target key start
LH: loop header
LB: loop body
LE: loop exit
PB: predicated region body
PF: predicated region fallthrough
CT: control target
= control target key end

     0   :  { %12 = vsyncpa [#allocation4], 0  ;;  %s645_s0 = inlined_call_operand.vmem [shape: f32[8,2], index: 0, kind: input, shape index: {}]   ;;  %s646_s1 = inlined_call_operand.vmem [shape: f32[8], index: 1, kind: input, shape index: {}]   ;;  %s647_s2 = inlined_call_operand.vmem [shape: f32[2,32], index: 2, kind: input, shape index: {}]   ;;  %s648_s3 = inlined_call_operand.vmem [shape: f32[32,64], index: 3, kind: input, shape index: {}]   ;;  %s649_s4 = inlined_call_operand.vmem [shape: f32[64,8], index: 4, kind: input, shape index: {}]   ;;  %s650_s5 = inlined_call_operand.vmem [shape: f32[8,8], index: 5, kind: input, shape index: {}]   ;;  %s651_s6 = inlined_call_operand.vmem [shape: f32[4,64], index: 6, kind: input, shape index: {}]   ;;  %s652_s7 = inlined_call_operand.hbm [shape: f32[8,8], index: 7, kind: output, shape index: {}]  }
   0x1   :  { %13 = vsyncpa [#allocation3], 0  ;;  %s22_s26 = sshll.u32 %s646_s1, 4  ;;  %s23_s26 = int_to_ptr.vmem [resolvable:$true] %s22_s26 }
   0x2   :  { %s477_s27 = scalar_lea.vmem %s23_s26, 16  ;;  %p482_p1 = scmp.lt.s32.totalorder %s23_s26, %s23_s26 }
   0x3   :  { %p478_p0 = scmp.ne.s32.totalorder %s23_s26, %s477_s27  ;;  %p483_p2 = scmp.lt.s32.totalorder %s477_s27, %s477_s27 }
   0x5   :  { %p484_p3 = por %p483_p2, %p482_p1 }
   0x7   :  { %p485_p4 = pnand %p484_p3, %p478_p0 }
   0x9   :  { %488 = shalt.err (!%p485_p4)
}
   0xa   :  { %s515_s28 = smov [#allocation2]  }
   0xb   :  { %25 = dma.vmem_to_smem %s23_s26, 16, %s515_s28, [#allocation4]  }
   0xc   :  { %511 = dma.done.wait [#allocation4], 16  }
   0xd   :  { %512 = vsyncadd [#allocation4], 4294967280 }
   0xe   :  { %39 = sfence }
   0xf   :  { %s41_s29 = sld [smem:[#allocation2]]  ;;  %s376_s30 = sld [smem:[#allocation2 + $0x1]]  ;;  %v516_v0 = vmov 0   ;;  %v40_v1 = vld [vmem:[%s645_s0] sm:$0xff]  ;;  %v101_v23 = vld [vmem:[%s648_s3 + $0x8] sm:$0xff]  ;;  %v517_v24 = vmov 1  }
  0x10   :  { %466 = vset.pattern.permute.xlu0 %v516_v0  ;;  %s377_s8 = sld [smem:[#allocation2 + $0x2]]  ;;  %468 = vset.pattern.permute.xlu1 %v516_v0  ;;  %s379_s1 = sld [smem:[#allocation2 + $0x4]]  ;;  %v100_v22 = vld [vmem:[%s648_s3] sm:$0xff]  ;;  %v518_v26 = vmov 0.0|0.0   ;;  %v102_v27 = vld [vmem:[%s648_s3 + $0x10] sm:$0xff]  ;;  %v103_v28 = vld [vmem:[%s648_s3 + $0x18] sm:$0xff] }
  0x11   :  { %s380_s9 = sld [smem:[#allocation2 + $0x5]]  ;;  %s378_s12 = sld [smem:[#allocation2 + $0x3]]  ;;  %v436_v25 = vpack.c.bf16 %v101_v23, %v100_v22  ;;  %435 = vmatprep.subr.bf16.mxu0 %v518_v26  ;;  %441 = vmatprep.subr.bf16.mxu1 %v518_v26  ;;  %v439_v29 = vpack.c.bf16 %v103_v28, %v102_v27  ;;  %vm519_vm0 = vmmov 0   ;;  %v520_v30 = vmov 0.0   ;;  %v184_v31 = vld [vmem:[%s649_s4] sm:$0xff]  ;;  %v185_v32 = vld [vmem:[%s649_s4 + $0x8] sm:$0xff] }
  0x12   :  { %s381_s13 = sld [smem:[#allocation2 + $0x6]]  ;;  %s382_s14 = sld [smem:[#allocation2 + $0x7]]  ;;  %413 = vmatprep.mubr.msk.f32.mxu0 %vm519_vm0, %v520_v30  ;;  %432 = vmatprep.mubr.msk.f32.mxu1 %vm519_vm0, %v520_v30  ;;  %v186_v33 = vld [vmem:[%s649_s4 + $0x10] sm:$0xff]  ;;  %v442_v34 = vpack.c.bf16 %v185_v32, %v184_v31  ;;  %v187_v35 = vld [vmem:[%s649_s4 + $0x18] sm:$0xff]  ;;  %v188_v37 = vld [vmem:[%s649_s4 + $0x20] sm:$0xff]  ;;  %vm108_vm1 = vcmask 261120  }
  0x13   :  { %437 = vmatpush3.bf16.msra.mxu0 %v436_v25  ;;  %v445_v36 = vpack.c.bf16 %v187_v35, %v186_v33  ;;  %v189_v38 = vld [vmem:[%s649_s4 + $0x28] sm:$0xff]  ;;  %v383_v41 = vld [vmem:[%s647_s2] ss:$0 sm:$0xff]  ;;  %v384_v42 = vld [vmem:[%s647_s2 + $0x1] ss:$0 sm:$0xff]  ;;  %vm196_vm2 = vcmask 523264  }
  0x14   :  { %438 = vmatprep.subr.bf16.mxu0 %v518_v26  ;;  %443 = vmatpush3.bf16.msra.mxu1 %v442_v34  ;;  %v448_v39 = vpack.c.bf16 %v189_v38, %v188_v37  ;;  %v385_v46 = vld [vmem:[%s651_s6] ss:$0 sm:$0xff]  ;;  %v190_v50 = vld [vmem:[%s649_s4 + $0x30] sm:$0xff]  ;;  %v191_v51 = vld [vmem:[%s649_s4 + $0x38] sm:$0xff]  ;;  %v521_v58 = vmov 3   ;;  %v522_v0 = vmov 6  }
  0x15   :  { %v42_v2 = vstv %s41_s29  ;;  %v45_v3 = vstv %s376_s30  ;;  %444 = vmatprep.subr.bf16.mxu1 %v518_v26  ;;  %v451_v52 = vpack.c.bf16 %v191_v51, %v190_v50  ;;  %v386_v53 = vld [vmem:[%s651_s6 + $0x1] ss:$0 sm:$0xff]  ;;  %v388_v59 = vld [vmem:[%s651_s6 + $0x2] ss:$0 sm:$0xff]  ;;  %vm359_vm3 = vcmask 64512  }
  0x16   :  { %v43_v4 = vmul.f32 %v42_v2, %v40_v1  ;;  %v56_v5 = vstv %s379_s1  ;;  %v49_v9 = vstv %s377_s8  ;;  %v524_v2 = vmov 7  }
  0x17   :  { %v59_v6 = vstv %s380_s9  ;;  %v57_v8 = vmul.f32 %v56_v5, %v40_v1  ;;  %v52_v12 = vstv %s378_s12  ;;  %440 = vmatpush3.bf16.msra.mxu0 %v439_v29  ;;  %v523_v1 = vmov 2  }
  0x18   :  { %v46_v7 = vadd.f32 %v45_v3, %v43_v4  ;;  %v63_v13 = vstv %s381_s13  ;;  %v66_v16 = vstv %s382_s14  ;;  %446 = vmatpush3.bf16.msra.mxu1 %v445_v36  ;;  %v525_v3 = vmov 4  }
  0x19   :  { %v60_v11 = vadd.f32 %v59_v6, %v57_v8  ;;  %447 = vmatprep.subr.bf16.mxu1 %v518_v26  ;;  %v526_v4 = vmov 5   ;;  %v278_v5 = vlaneseq  ;;  %v272_v8 = vld [vmem:[%s650_s5] sm:$0xff]  ;;  %s527_s5 = smov [#allocation5]  }
  0x1a   :  { %v47_v10 = vmax.f32 %v46_v7, 0.0 }
  0x1b   :  { %v61_v15 = vmax.f32 %v60_v11, 0.0  ;;  %v279_v6 = vshrl.u32 %v278_v5, 7 }
  0x1c   :  { %v50_v14 = vmul.f32 %v49_v9, %v47_v10  ;;  %449 = vmatpush3.bf16.msra.mxu1 %v448_v39 }
  0x1d   :  { %v64_v18 = vmul.f32 %v63_v13, %v61_v15  ;;  %450 = vmatprep.subr.bf16.mxu1 %v518_v26  ;;  %v280_v7 = vsub.s32 0, %v279_v6  ;;  %v294_v9 = vsub.s32 1, %v279_v6  ;;  %v304_v13 = vsub.s32 2, %v279_v6 }
  0x1e   :  { %v53_v17 = vadd.f32 %v52_v12, %v50_v14  ;;  %v334_v29 = vsub.s32 5, %v279_v6  ;;  %v344_v31 = vsub.s32 6, %v279_v6  ;;  %v354_v36 = vsub.s32 7, %v279_v6 }
  0x1f   :  { %v67_v20 = vadd.f32 %v66_v16, %v64_v18  ;;  %v281_v11 = vrot.slane %v272_v8, %v280_v7  ;;  %v295_v12 = vrot.slane %v272_v8, %v294_v9  ;;  %v390_v16 = vld [vmem:[%s651_s6 + $0x3] ss:$0 sm:$0xff]  ;;  %s367_s6 = sshll.u32 %s527_s5, 4  ;;  %s368_s6 = int_to_ptr.vmem [resolvable:$true] %s367_s6 }
  0x20   :  { %v54_v19 = vmax.f32 %v53_v17, 0.0  ;;  %452 = vmatpush3.bf16.msra.mxu1 %v451_v52  ;;  %v314_v17 = vsub.s32 3, %v279_v6  ;;  %v335_v35 = vrot.slane %v272_v8, %v334_v29  ;;  %v345_v37 = vrot.slane %v272_v8, %v344_v31  ;;  %s489_s24 = scalar_lea.vmem %s368_s6, 128  ;;  %p494_p6 = scmp.lt.s32.totalorder %s368_s6, %s368_s6 }
  0x21   :  { %v68_v21 = vmax.f32 %v67_v20, 0.0  ;;  %p490_p5 = scmp.ne.s32.totalorder %s368_s6, %s489_s24  ;;  %p495_p7 = scmp.lt.s32.totalorder %s489_s24, %s489_s24 }
  0x22   :  { %73 = vperm.xlu0 %466, %v54_v19   ;;  %v305_v19 = vrot.slane %v272_v8, %v304_v13  ;;  %v315_v23 = vrot.slane %v272_v8, %v314_v17 }
  0x23   :  { %p496_p8 = por %p495_p7, %p494_p6 }
  0x25   :  { %p497_p9 = pnand %p496_p8, %p490_p5 }
  0x26   :  { %467 = vset.pattern.permute.xlu0 %v517_v24 }
  0x27   :  { %84 = vperm.xlu0 %467, %v68_v21   ;;  %v324_v21 = vsub.s32 4, %v279_v6 }
  0x29   :  { %v325_v28 = vrot.slane %v272_v8, %v324_v21 }
  0x2b   :  { %471 = vset.pattern.permute.xlu0 %v521_v58 }
  0xa1   :  { %v74_v40 = vpop.permute.xlu0 %73 }
  0xa2   :  { %v80_v44 = vmul.f32 %v383_v41, %v74_v40 }
  0xa6   :  { %v85_v43 = vpop.permute.xlu0 %84 }
  0xa7   :  { %v91_v45 = vmul.f32 %v384_v42, %v85_v43  ;;  %v355_v42 = vrot.slane %v272_v8, %v354_v36 }
  0xa9   :  { %v92_v47 = vadd.f32 %v91_v45, %v80_v44 }
  0xab   :  { %v97_v48 = vadd.f32 %v385_v46, %v92_v47 }
  0xad   :  { %v98_v49 = vmax.f32 %v97_v48, 0.0 }
  0xaf   :  { %414 = vmatmul.mubr.msk.f32.vlgmr.msra.gmra.mrb[0].mxu0 %vm108_vm1, %v98_v49 }
 0x182   :  { %v178_v54 = vpop.f32.mrb[0].mxu0 }
 0x183   :  { %v179_v55 = vadd.f32 %v386_v53, %v178_v54  ;;  %v415_v56 = vpop.f32.mrb[1].mxu0 }
 0x185   :  { %v182_v57 = vmax.f32 %v179_v55, 0.0 }
 0x187   :  { %433 = vmatmul.mubr.msk.f32.vlgmr.msra.gmra.mrb[0].mxu1 %vm196_vm2, %v182_v57 }
 0x25a   :  { %v266_v60 = vpop.f32.mrb[0].mxu1 }
 0x25b   :  { %v267_v61 = vadd.f32 %v388_v59, %v266_v60  ;;  %v434_v62 = vpop.f32.mrb[1].mxu1 }
 0x25d   :  { %v270_v63 = vmax.f32 %v267_v61, 0.0 }
 0x25f   :  { %309 = vperm.xlu0 %471, %v270_v63   ;;  %275 = vperm.xlu1 %468, %v270_v63  }
 0x263   :  { %474 = vset.pattern.permute.xlu0 %v522_v0  ;;  %469 = vset.pattern.permute.xlu1 %v517_v24 }
 0x264   :  { %339 = vperm.xlu0 %474, %v270_v63   ;;  %289 = vperm.xlu1 %469, %v270_v63  }
 0x268   :  { %470 = vset.pattern.permute.xlu1 %v523_v1  ;;  %476 = vset.pattern.permute.xlu0 %v524_v2 }
 0x269   :  { %299 = vperm.xlu1 %470, %v270_v63  }
 0x26d   :  { %472 = vset.pattern.permute.xlu1 %v525_v3 }
 0x26e   :  { %319 = vperm.xlu1 %472, %v270_v63  }
 0x272   :  { %473 = vset.pattern.permute.xlu1 %v526_v4 }
 0x273   :  { %329 = vperm.xlu1 %473, %v270_v63  }
 0x277   :  { %475 = vset.pattern.permute.xlu1 %v524_v2 }
 0x278   :  { %349 = vperm.xlu1 %475, %v270_v63  }
 0x2de   :  { %v276_v10 = vpop.permute.xlu1 %275  ;;  %v310_v26 = vpop.permute.xlu0 %309 }
 0x2df   :  { %v282_v14 = vmul.f32 %v281_v11, %v276_v10  ;;  %v316_v30 = vmul.f32 %v315_v23, %v310_v26 }
 0x2e1   :  { %v287_v20 = vadd.f32 %v390_v16, %v282_v14 }
 0x2e3   :  { %v290_v15 = vpop.permute.xlu1 %289  ;;  %v340_v38 = vpop.permute.xlu0 %339 }
 0x2e4   :  { %v296_v18 = vmul.f32 %v295_v12, %v290_v15  ;;  %v346_v43 = vmul.f32 %v345_v37, %v340_v38 }
 0x2e6   :  { %v297_v24 = vadd.f32 %v296_v18, %v287_v20 }
 0x2e8   :  { %v300_v22 = vpop.permute.xlu1 %299 }
 0x2e9   :  { %v306_v25 = vmul.f32 %v305_v19, %v300_v22 }
 0x2eb   :  { %v307_v27 = vadd.f32 %v306_v25, %v297_v24 }
 0x2ed   :  { %v320_v32 = vpop.permute.xlu1 %319  ;;  %v317_v33 = vadd.f32 %v316_v30, %v307_v27 }
 0x2ee   :  { %v326_v34 = vmul.f32 %v325_v28, %v320_v32 }
 0x2f0   :  { %v327_v40 = vadd.f32 %v326_v34, %v317_v33 }
 0x2f2   :  { %v330_v39 = vpop.permute.xlu1 %329 }
 0x2f3   :  { %v336_v41 = vmul.f32 %v335_v35, %v330_v39 }
 0x2f5   :  { %v337_v44 = vadd.f32 %v336_v41, %v327_v40 }
 0x2f7   :  { %v347_v45 = vadd.f32 %v346_v43, %v337_v44  ;;  %v350_v46 = vpop.permute.xlu1 %349 }
 0x2f8   :  { %v356_v47 = vmul.f32 %v355_v42, %v350_v46 }
 0x2fa   :  { %v357_v48 = vadd.f32 %v356_v47, %v347_v45 }
 0x2fc   :  { %v358_v49 = vmax.f32 %v357_v48, 0.0 }
 0x2fe   :  { %360 = vst.msk [vmem:[#allocation5] sm:$0xff] %vm359_vm3, %v358_v49 }
 0x2ff   :  { %500 = shalt.err (!%p497_p9)
}
 0x300   :  { %s501_s27 = scalar_lea.hbm %s652_s7, 128 }
 0x301   :  { %p502_p10 = scmp.ne.s32.totalorder %s652_s7, %s501_s27  ;;  %p505_p11 = scmp.lt.u32.totalorder %s501_s27, %s652_s7 }
 0x303   :  { %p507_p12 = pnand %p505_p11, %p502_p10 }
 0x305   :  { %510 = shalt.err (!%p507_p12)
}
 0x306   :  { %370 = dma.vmem_to_hbm [thread:$0]  %s368_s6, 128, %s652_s7, [#allocation3]  }
 0x307   :  { %513 = dma.done.wait [#allocation3], 128  }
 0x308   :  { %514 = vsyncadd [#allocation3], 4294967168 }
 0x309   :  { %374 = vsyncpa [#allocation3], 1 }
 0x30a   :  { %375 = vsyncpa [#allocation4], 1 }

</bundles_post_ra>
